<compile_context>
chip_gen: v5e
topology: v5e:2x2
jax: 0.10.0
libtpu: 0.0.40
codegen_flags: <defaults>
</compile_context>

<pallas_src>
import jax
import jax.numpy as jnp
from jax.experimental import pallas as pl
from jax.experimental.pallas import tpu as pltpu


def _gcn_kernel(x_ref, w1m_ref, b1_ref, w2_ref, o_ref):
    """One grid step: TB batch elements in the original (TB, S, N) layout.

    x_ref  : (TB, S, N)  input dtype
    w1m_ref: (N, N)      W1^T - I_N  (residual folded into the weight)
    b1_ref : (1, N)      conv1 bias, f32
    w2_ref : (S, S)      conv2 weight
    o_ref  : (TB, S, N)
    """
    TB, S, N = x_ref.shape

    # conv1 (+ folded residual): sublane-packed (TB*S, N) @ (N, N) MXU matmul
    # with f32 accumulation; bias broadcast over rows.  The reshape only merges
    # the two leading dims (lane dim untouched) -> layout preserving.
    x2 = x_ref[...].reshape(TB * S, N)
    h = jnp.dot(x2, w1m_ref[...], preferred_element_type=jnp.float32)
    h = h + b1_ref[...]                                        # (TB*S, N) f32

    # Pack the TB batch elements along the lane axis (idle XLU / store slots)
    # so conv2 is a single lane-dense MXU call: (S, S) @ (S, TB*N).
    h_ld = jnp.concatenate(
        [h[t * S:(t + 1) * S, :] for t in range(TB)], axis=1)  # (S, TB*N)
    out_ld = jnp.dot(w2_ref[...], h_ld.astype(w2_ref.dtype),
                     preferred_element_type=jnp.float32)
    out_ld = jnp.maximum(out_ld, 0.0)                          # ReLU

    # Unpack back to the original (TB, S, N) layout and store.
    for t in range(TB):
        o_ref[t, :, :] = out_ld[:, t * N:(t + 1) * N].astype(o_ref.dtype)


def _choose_block_batch(B, S, N, itemsize, *, lane_target=128,
                        slab_target_bytes=1 << 20, max_unroll=64):
    """Batch elements processed per grid step.

    - reach >= lane_target lanes for conv2 (TB*N) so its vregs/stores are
      dense rather than masked (biggest single measured lever);
    - then grow toward ~1 MiB per-step slabs (HBM-roofline lever), capped so
      the static in-kernel pack/unpack unroll stays small;
    - never shrink just to manufacture >=2 grid steps (that only duplicates
      fixed overhead / resident-weight DMAs on mem-bound FSPNet shapes);
    - snap to a divisor of B so the grid tiles the batch exactly.
    """
    tb = pl.cdiv(lane_target, N)
    tb = max(tb, slab_target_bytes // max(1, S * N * itemsize))
    tb = int(min(B, max(1, min(tb, max_unroll))))
    while B % tb:
        tb -= 1
    return tb


def gcn_forward(x, w1, b1, w2, *, block_batch=None):
    """Pallas forward of GCN.  x: (B, S, N), w1: (N, N), b1: (N,), w2: (S, S)."""
    B, S, N = x.shape
    TB = (_choose_block_batch(B, S, N, x.dtype.itemsize)
          if block_batch is None else block_batch)
    assert B % TB == 0, (B, TB)
    G = B // TB

    # One-time weight prep (cheap XLA ops; constant-folded under jit).
    w1m = (w1.T - jnp.eye(N, dtype=w1.dtype)).astype(x.dtype)   # fold `h - x`
    w2c = w2.astype(x.dtype)
    b1r = b1.astype(jnp.float32).reshape(1, N)

    # Cost estimate consistent with the kernel emitted (no kron waste,
    # no wrapper pack/unpack traffic).
    flops = 2 * B * S * N * N + 2 * B * S * S * N
    bytes_accessed = ((2 * x.size + w1m.size + w2c.size) * x.dtype.itemsize
                      + b1r.size * 4)
    cost = pl.CostEstimate(flops=flops, transcendentals=0,
                           bytes_accessed=bytes_accessed)

    return pl.pallas_call(
        _gcn_kernel,
        out_shape=jax.ShapeDtypeStruct((B, S, N), x.dtype),
        grid_spec=pltpu.PrefetchScalarGridSpec(
            num_scalar_prefetch=0,
            grid=(G,),
            in_specs=[
                pl.BlockSpec((TB, S, N), lambda g: (g, 0, 0)),   # x batch chunk
                pl.BlockSpec((N, N), lambda g: (0, 0)),          # W1^T - I (resident)
                pl.BlockSpec((1, N), lambda g: (0, 0)),          # conv1 bias (resident)
                pl.BlockSpec((S, S), lambda g: (0, 0)),          # W2 (resident)
            ],
            out_specs=pl.BlockSpec((TB, S, N), lambda g: (g, 0, 0)),
        ),
        compiler_params=pltpu.CompilerParams(
            # Batch chunks are independent, but the op is HBM/overhead-bound:
            # keep the grid serial on one core rather than duplicating the
            # resident-weight DMAs across v7x's two TensorCores.
            dimension_semantics=("arbitrary",),
            # Raises v5e's 16 MiB default; equals the v6e/v7x default and stays
            # safely under v7x's 64 MiB physical VMEM with double-buffered slabs.
            vmem_limit_bytes=32 * 1024 * 1024,
        ),
        cost_estimate=cost,
    )(x, w1m, b1r, w2c)


def gcn_reference(x, w1, b1, w2):
    """Pure-JAX reference matching the PyTorch forward exactly."""
    h = jnp.einsum("bsn,mn->bsm", x, w1) + b1[None, None, :]
    h = h - x
    out = jnp.einsum("ts,bsn->btn", w2, h)
    return jnp.maximum(out, 0.0)


if __name__ == "__main__":
    # Small shapes consistent with the module: batch=2, num_state=32, num_node=16.
    B, S, N = 2, 32, 16
    key = jax.random.PRNGKey(0)
    kx, kw1, kb1, kw2 = jax.random.split(key, 4)

    x = jax.random.normal(kx, (B, S, N), dtype=jnp.float32)
    # Deterministic "PyTorch-style" uniform init (bound = 1/sqrt(fan_in)).
    bound1 = 1.0 / (N ** 0.5)
    bound2 = 1.0 / (S ** 0.5)
    w1 = jax.random.uniform(kw1, (N, N), jnp.float32, -bound1, bound1)
    b1 = jax.random.uniform(kb1, (N,), jnp.float32, -bound1, bound1)
    w2 = jax.random.uniform(kw2, (S, S), jnp.float32, -bound2, bound2)

    out = jax.jit(gcn_forward)(x, w1, b1, w2)
    out = jax.block_until_ready(out)

    ref = gcn_reference(x, w1, b1, w2)
    assert out.shape == (B, S, N)
    # Tolerance accounts for TPU default-precision f32 matmuls (bf16 MXU
    # passes) differing in summation order between the kernel and the XLA
    # reference; a real layout/semantics bug would produce O(1) errors.
    max_err = float(jnp.max(jnp.abs(out - ref)))
    assert max_err < 2e-2, f"mismatch vs reference: max abs err = {max_err}"

    print("KERNEL_OK")
</pallas_src>

<mosaic_0001>
module attributes {stable_mosaic.version = 11 : i64} {
  func.func @_gcn_kernel(%arg0: i32, %arg1: memref<2x32x16xf32, #tpu.memory_space<vmem>>, %arg2: memref<16x16xf32, #tpu.memory_space<vmem>>, %arg3: memref<1x16xf32, #tpu.memory_space<vmem>>, %arg4: memref<32x32xf32, #tpu.memory_space<vmem>>, %arg5: memref<2x32x16xf32, #tpu.memory_space<vmem>>) attributes {dimension_semantics = [#tpu.dimension_semantics<arbitrary>], iteration_bounds = array<i64: 1>, scalar_prefetch = 0 : i64, scratch_operands = 0 : i64, tpu.core_type = #tpu.core_type<tc>, window_params = [{transform_indices = @transform_0, window_bounds = array<i64: 2, 32, 16>}, {pipeline_mode = #tpu.pipeline_mode<synchronous>, transform_indices = @transform_1, window_bounds = array<i64: 16, 16>}, {pipeline_mode = #tpu.pipeline_mode<synchronous>, transform_indices = @transform_2, window_bounds = array<i64: 1, 16>}, {pipeline_mode = #tpu.pipeline_mode<synchronous>, transform_indices = @transform_3, window_bounds = array<i64: 32, 32>}, {transform_indices = @transform_4, window_bounds = array<i64: 2, 32, 16>}]} {
    %c0 = arith.constant 0 : index
    %c0_0 = arith.constant 0 : index
    %c0_1 = arith.constant 0 : index
    %0 = vector.load %arg1[%c0, %c0_0, %c0_1] : memref<2x32x16xf32, #tpu.memory_space<vmem>>, vector<2x32x16xf32>
    %1 = vector.shape_cast %0 : vector<2x32x16xf32> to vector<64x16xf32>
    %c0_2 = arith.constant 0 : index
    %c0_3 = arith.constant 0 : index
    %2 = vector.load %arg2[%c0_2, %c0_3] : memref<16x16xf32, #tpu.memory_space<vmem>>, vector<16x16xf32>
    %cst = arith.constant dense<0.000000e+00> : vector<64x16xf32>
    %3 = tpu.matmul %1, %2, %cst {dimension_numbers = #tpu.dot_dimension_numbers<[1], [0], [0], [1], [0, 0, 1, 1], [], []>} : vector<64x16xf32>, vector<16x16xf32>, vector<64x16xf32> -> vector<64x16xf32>
    %c0_4 = arith.constant 0 : index
    %c0_5 = arith.constant 0 : index
    %4 = vector.load %arg3[%c0_4, %c0_5] : memref<1x16xf32, #tpu.memory_space<vmem>>, vector<1x16xf32>
    %5 = vector.broadcast %4 : vector<1x16xf32> to vector<64x16xf32>
    %6 = arith.addf %3, %5 : vector<64x16xf32>
    %7 = vector.extract_strided_slice %6 {offsets = [0, 0], sizes = [32, 16], strides = [1, 1]} : vector<64x16xf32> to vector<32x16xf32>
    %8 = vector.extract_strided_slice %6 {offsets = [32, 0], sizes = [32, 16], strides = [1, 1]} : vector<64x16xf32> to vector<32x16xf32>
    %9 = tpu.concatenate %7, %8 in 1 : vector<32x16xf32>, vector<32x16xf32> -> vector<32x32xf32>
    %c0_6 = arith.constant 0 : index
    %c0_7 = arith.constant 0 : index
    %10 = vector.load %arg4[%c0_6, %c0_7] : memref<32x32xf32, #tpu.memory_space<vmem>>, vector<32x32xf32>
    %cst_8 = arith.constant dense<0.000000e+00> : vector<32x32xf32>
    %11 = tpu.matmul %10, %9, %cst_8 {dimension_numbers = #tpu.dot_dimension_numbers<[1], [0], [0], [1], [0, 0, 1, 1], [], []>} : vector<32x32xf32>, vector<32x32xf32>, vector<32x32xf32> -> vector<32x32xf32>
    %cst_9 = arith.constant 0.000000e+00 : f32
    %12 = vector.broadcast %cst_9 : f32 to vector<32x32xf32>
    %13 = arith.maximumf %11, %12 : vector<32x32xf32>
    %14 = vector.extract_strided_slice %13 {offsets = [0, 0], sizes = [32, 16], strides = [1, 1]} : vector<32x32xf32> to vector<32x16xf32>
    %c0_10 = arith.constant 0 : index
    %c0_11 = arith.constant 0 : index
    %c0_12 = arith.constant 0 : index
    %15 = vector.load %arg5[%c0_10, %c0_11, %c0_12] : memref<2x32x16xf32, #tpu.memory_space<vmem>>, vector<1x32x16xf32>
    %16 = vector.shape_cast %15 : vector<1x32x16xf32> to vector<32x16xf32>
    %17 = vector.shape_cast %14 : vector<32x16xf32> to vector<1x32x16xf32>
    tpu.vector_store %arg5[%c0_10, %c0_11, %c0_12], %17 {strides = array<i32>} : memref<2x32x16xf32, #tpu.memory_space<vmem>>, vector<1x32x16xf32>,
    %18 = vector.extract_strided_slice %13 {offsets = [0, 16], sizes = [32, 16], strides = [1, 1]} : vector<32x32xf32> to vector<32x16xf32>
    %c1 = arith.constant 1 : index
    %c0_13 = arith.constant 0 : index
    %c0_14 = arith.constant 0 : index
    %19 = vector.load %arg5[%c1, %c0_13, %c0_14] : memref<2x32x16xf32, #tpu.memory_space<vmem>>, vector<1x32x16xf32>
    %20 = vector.shape_cast %19 : vector<1x32x16xf32> to vector<32x16xf32>
    %21 = vector.shape_cast %18 : vector<32x16xf32> to vector<1x32x16xf32>
    tpu.vector_store %arg5[%c1, %c0_13, %c0_14], %21 {strides = array<i32>} : memref<2x32x16xf32, #tpu.memory_space<vmem>>, vector<1x32x16xf32>,
    return
  }
  func.func @transform_0(%arg0: i32) -> (i32, i32, i32) {
    %c0_i32 = arith.constant 0 : i32
    %c0_i32_0 = arith.constant 0 : i32
    %c0_i32_1 = arith.constant 0 : i32
    return %arg0, %c0_i32, %c0_i32_0 : i32, i32, i32
  }
  func.func @transform_1(%arg0: i32) -> (i32, i32) {
    %c0_i32 = arith.constant 0 : i32
    %c0_i32_0 = arith.constant 0 : i32
    %c0_i32_1 = arith.constant 0 : i32
    return %c0_i32, %c0_i32_0 : i32, i32
  }
  func.func @transform_2(%arg0: i32) -> (i32, i32) {
    %c0_i32 = arith.constant 0 : i32
    %c0_i32_0 = arith.constant 0 : i32
    %c0_i32_1 = arith.constant 0 : i32
    return %c0_i32, %c0_i32_0 : i32, i32
  }
  func.func @transform_3(%arg0: i32) -> (i32, i32) {
    %c0_i32 = arith.constant 0 : i32
    %c0_i32_0 = arith.constant 0 : i32
    %c0_i32_1 = arith.constant 0 : i32
    return %c0_i32, %c0_i32_0 : i32, i32
  }
  func.func @transform_4(%arg0: i32) -> (i32, i32, i32) {
    %c0_i32 = arith.constant 0 : i32
    %c0_i32_0 = arith.constant 0 : i32
    %c0_i32_1 = arith.constant 0 : i32
    return %arg0, %c0_i32, %c0_i32_0 : i32, i32, i32
  }
}

</mosaic_0001>

<bundles_post_ra>
// kernel: gcn_forward.1
= control target key start
LH: loop header
LB: loop body
LE: loop exit
PB: predicated region body
PF: predicated region fallthrough
CT: control target
= control target key end

     0   :  { %vm31_vm0 = vcmask 130048   ;;  %s233_s10 = smov 16   ;;  %vm121_vm1 = vcmask 261120   ;;  %s234_s19 = smov 112   ;;  %s349_s1 = inlined_call_operand.vmem [shape: f32[16,16], index: 1, kind: input, shape index: {}]   ;;  %s350_s0 = inlined_call_operand.vmem [shape: f32[2,32,16], index: 0, kind: input, shape index: {}]   ;;  %s351_s2 = inlined_call_operand.vmem [shape: f32[1,16], index: 2, kind: input, shape index: {}]   ;;  %s352_s3 = inlined_call_operand.vmem [shape: f32[32,32], index: 3, kind: input, shape index: {}]   ;;  %s353_s4 = inlined_call_operand.vmem [shape: f32[2,32,16], index: 4, kind: output, shape index: {}]  }
   0x1   :  { %v26_v0 = vld [vmem:[%s349_s1 + $0x8] sm:$0xff]  ;;  %v25_v1 = vld [vmem:[%s349_s1] sm:$0xff]  ;;  %v23_v4 = vld [vmem:[%s350_s0 + $0x30] sm:$0xff] }
   0x2   :  { %213 = vmatpush.msra.mxu3 %v26_v0  ;;  %v21_v2 = vld [vmem:[%s350_s0 + $0x20] sm:$0xff]  ;;  %70 = vmatpush.msra.mxu0 %v26_v0  ;;  %v22_v3 = vld [vmem:[%s350_s0 + $0x28] sm:$0xff]  ;;  %v24_v5 = vld [vmem:[%s350_s0 + $0x38] sm:$0xff] }
   0x3   :  { %212 = vmatpush.msra.mxu2 %v26_v0  ;;  %v17_v6 = vld [vmem:[%s350_s0] sm:$0xff]  ;;  %v18_v7 = vld [vmem:[%s350_s0 + $0x8] sm:$0xff]  ;;  %v20_v8 = vld [vmem:[%s350_s0 + $0x18] sm:$0xff] }
   0x4   :  { %215 = vmatpush.msra.mxu3 %v25_v1  ;;  %71 = vmatpush.msra.mxu0 %v25_v1  ;;  %v19_v9 = vld [vmem:[%s350_s0 + $0x10] sm:$0xff]  ;;  %v232_v13 = vld [vmem:[%s351_s2] ss:$0 sm:$0xff]  ;;  %v120_v39 = vld [vmem:[%s352_s3 + $0x18] sm:$0xff] }
   0x5   :  { %200 = vmatmul.msk.f32.vlgmr.msra.gmra.mxu3 %vm31_vm0, %v21_v2  ;;  %214 = vmatpush.msra.mxu2 %v25_v1  ;;  %v117_v38 = vld [vmem:[%s352_s3] sm:$0xff]  ;;  %v118_v41 = vld [vmem:[%s352_s3 + $0x8] sm:$0xff]  ;;  %v119_v42 = vld [vmem:[%s352_s3 + $0x10] sm:$0xff] }
   0x6   :  { %196 = vmatmul.msk.f32.vlgmr.msra.gmra.mxu0 %vm31_vm0, %v17_v6  ;;  %199 = vmatmul.msk.f32.vlgmr.msra.gmra.mxu2 %vm31_vm0, %v20_v8 }
   0xd   :  { %201 = vmatmul.msk.f32.gmra.mxu3 %vm31_vm0, %v22_v3 }
   0xe   :  { %197 = vmatmul.msk.f32.gmra.mxu0 %vm31_vm0, %v18_v7 }
  0x15   :  { %202 = vmatmul.msk.f32.gmra.mxu3 %vm31_vm0, %v23_v4 }
  0x16   :  { %198 = vmatmul.msk.f32.gmra.mxu0 %vm31_vm0, %v19_v9 }
  0x1d   :  { %203 = vmatmul.msk.f32.gmra.mxu3 %vm31_vm0, %v24_v5 }
  0x83   :  { %v73_v21 = vpop.f32.mrf.mxu0 }
  0x84   :  { %v74_v36 = vadd.f32 %v232_v13, %v73_v21 }
  0x88   :  { %v85_v10 = vpop.f32.mrf.mxu3 }
  0x89   :  { %v86_v19 = vadd.f32 %v232_v13, %v85_v10  ;;  %v82_v23 = vpop.f32.mrf.mxu2 }
  0x8a   :  { %v83_v25 = vadd.f32 %v232_v13, %v82_v23 }
  0x8b   :  { %v76_v22 = vpop.f32.mrf.mxu0 }
  0x8c   :  { %v77_v33 = vadd.f32 %v232_v13, %v76_v22 }
  0x90   :  { %v88_v11 = vpop.f32.mrf.mxu3 }
  0x91   :  { %v89_v18 = vadd.f32 %v232_v13, %v88_v11 }
  0x93   :  { %v227_v20 = vpack.i.bf16 %v86_v19, %v89_v18  ;;  %v79_v24 = vpop.f32.mrf.mxu0 }
  0x94   :  { %v80_v29 = vadd.f32 %v232_v13, %v79_v24 }
  0x98   :  { %v91_v12 = vpop.f32.mrf.mxu3 }
  0x99   :  { %v92_v15 = vadd.f32 %v232_v13, %v91_v12 }
  0xa0   :  { %v94_v14 = vpop.f32.mrf.mxu3 }
  0xa1   :  { %v95_v16 = vadd.f32 %v232_v13, %v94_v14 }
  0xa3   :  { %v222_v17 = vpack.i.bf16 %v92_v15, %v95_v16 }
  0xa5   :  { %223 = vrot.lane.b32.xlu0 %v222_v17, %s233_s10 }
  0xad   :  { %228 = vrot.lane.b32.xlu0 %v227_v20, %s233_s10 }
 0x117   :  { %v224_v26 = vpop.permute.xlu0 %223 }
 0x118   :  { %v226_v27 = vunpack.i.h.bf16 %v224_v26  ;;  %v225_v28 = vunpack.i.l.bf16 %v224_v26 }
 0x11a   :  { %v116_v30 = vsel %vm31_vm0, %v83_v25, %v225_v28  ;;  %v115_v31 = vsel %vm31_vm0, %v80_v29, %v226_v27 }
 0x11b   :  { %146 = vmatpush.msra.mxu1 %v116_v30  ;;  %216 = vmatpush.msrb.mxu2 %v116_v30 }
 0x11d   :  { %147 = vmatpush.msra.mxu1 %v115_v31  ;;  %217 = vmatpush.msrb.mxu2 %v115_v31 }
 0x11f   :  { %v229_v32 = vpop.permute.xlu0 %228 }
 0x120   :  { %v231_v34 = vunpack.i.h.bf16 %v229_v32  ;;  %v230_v35 = vunpack.i.l.bf16 %v229_v32 }
 0x122   :  { %v114_v37 = vsel %vm31_vm0, %v77_v33, %v230_v35  ;;  %v113_v40 = vsel %vm31_vm0, %v74_v36, %v231_v34 }
 0x123   :  { %148 = vmatpush.msra.mxu1 %v114_v37  ;;  %218 = vmatpush.msrb.mxu2 %v114_v37 }
 0x125   :  { %149 = vmatpush.msra.mxu1 %v113_v40  ;;  %219 = vmatpush.msrb.mxu2 %v113_v40 }
 0x126   :  { %204 = vmatmul.msk.f32.vlgmr.msra.gmra.mxu1 %vm121_vm1, %v117_v38  ;;  %207 = vmatmul.msk.f32.vlgmr.msrb.gmra.mxu2 %vm121_vm1, %v120_v39 }
 0x12e   :  { %205 = vmatmul.msk.f32.gmra.mxu1 %vm121_vm1, %v118_v41 }
 0x136   :  { %206 = vmatmul.msk.f32.gmra.mxu1 %vm121_vm1, %v119_v42 }
 0x1a3   :  { %v151_v43 = vpop.f32.mrf.mxu1 }
 0x1a4   :  { %v163_v44 = vmax.f32 %v151_v43, 0.0 }
 0x1a6   :  { %167 = vst.msk [vmem:[%s353_s4] sm:$0xff] %vm31_vm0, %v163_v44  ;;  %175 = vrot.lane.b32.xlu1 %v163_v44, %s234_s19 }
 0x1a9   :  { %v160_v45 = vpop.f32.mrf.mxu2 }
 0x1aa   :  { %v166_v46 = vmax.f32 %v160_v45, 0.0 }
 0x1ab   :  { %v154_v47 = vpop.f32.mrf.mxu1 }
 0x1ac   :  { %v164_v48 = vmax.f32 %v154_v47, 0.0  ;;  %170 = vst.msk [vmem:[%s353_s4 + $0x18] sm:$0xff] %vm31_vm0, %v166_v46 }
 0x1ae   :  { %168 = vst.msk [vmem:[%s353_s4 + $0x8] sm:$0xff] %vm31_vm0, %v164_v48  ;;  %177 = vrot.lane.b32.xlu1 %v164_v48, %s234_s19 }
 0x1b3   :  { %v157_v49 = vpop.f32.mrf.mxu1 }
 0x1b4   :  { %v165_v50 = vmax.f32 %v157_v49, 0.0 }
 0x1b6   :  { %169 = vst.msk [vmem:[%s353_s4 + $0x10] sm:$0xff] %vm31_vm0, %v165_v50  ;;  %179 = vrot.lane.b32.xlu2 %v165_v50, %s234_s19 }
 0x1be   :  { %181 = vrot.lane.b32.xlu2 %v166_v46, %s234_s19 }
 0x210   :  { %v180_v51 = vpop.permute.xlu2 %179 }
 0x211   :  { %210 = vst.msk [vmem:[%s353_s4 + $0x30] sm:$0xff] %vm31_vm0, %v180_v51 }
 0x218   :  { %v176_v52 = vpop.permute.xlu1 %175  ;;  %v182_v53 = vpop.permute.xlu2 %181 }
 0x219   :  { %208 = vst.msk [vmem:[%s353_s4 + $0x20] sm:$0xff] %vm31_vm0, %v176_v52 }
 0x21a   :  { %211 = vst.msk [vmem:[%s353_s4 + $0x38] sm:$0xff] %vm31_vm0, %v182_v53 }
 0x220   :  { %v178_v54 = vpop.permute.xlu1 %177 }
 0x221   :  { %209 = vst.msk [vmem:[%s353_s4 + $0x28] sm:$0xff] %vm31_vm0, %v178_v54 }

</bundles_post_ra>
